<compile_context>
chip_gen: v6e
topology: v6e:2x2x1
jax: 0.10.0
libtpu: 0.0.40
codegen_flags: <defaults>
</compile_context>

<pallas_src>
import functools

import jax
import jax.numpy as jnp
from jax import lax
from jax.experimental import pallas as pl
from jax.experimental.pallas import tpu as pltpu


def _layernorm(h, gamma, beta, eps=1e-5):
    mu = jnp.mean(h, axis=-1, keepdims=True)
    var = jnp.mean((h - mu) ** 2, axis=-1, keepdims=True)
    return (h - mu) * lax.rsqrt(var + eps) * gamma + beta


def _gelu_exact(h):
    # nn.GELU() default: exact erf formulation (kept to match PyTorch semantics).
    return 0.5 * h * (1.0 + lax.erf(h * (1.0 / jnp.sqrt(2.0).astype(h.dtype))))


def adapter_kernel(z_ref,
                   w1_ref, b1_ref, g1_ref, be1_ref,
                   w2_ref, b2_ref, g2_ref, be2_ref,
                   w3_ref, b3_ref, g3_ref, be3_ref,
                   out_ref, *, compute_dtype):
    # Matmuls run on the MXU in `compute_dtype` (bf16 by default) with f32
    # accumulation; all elementwise math (LayerNorm / GELU) stays in f32.
    x = z_ref[...].astype(compute_dtype)

    # Linear(base -> red) + LayerNorm + GELU   (Dropout = identity, eval mode)
    h = jnp.dot(x, w1_ref[...].astype(compute_dtype),
                preferred_element_type=jnp.float32) + b1_ref[...]
    h = _gelu_exact(_layernorm(h, g1_ref[...], be1_ref[...]))

    # Linear(red -> red) + LayerNorm + GELU
    h = jnp.dot(h.astype(compute_dtype), w2_ref[...].astype(compute_dtype),
                preferred_element_type=jnp.float32) + b2_ref[...]
    h = _gelu_exact(_layernorm(h, g2_ref[...], be2_ref[...]))

    # Linear(red -> base) + LayerNorm
    h = jnp.dot(h.astype(compute_dtype), w3_ref[...].astype(compute_dtype),
                preferred_element_type=jnp.float32) + b3_ref[...]
    h = _layernorm(h, g3_ref[...], be3_ref[...])

    out_ref[...] = h.astype(out_ref.dtype)


def _round_up(x, m):
    return ((x + m - 1) // m) * m


def _choose_row_tile(M, requested):
    """Pick an MXU-friendly row tile: multiple of 8, large (default 512), but
    shrunk so the grid keeps >=4 steps for megacore load balance when M allows."""
    rt = max(8, (requested // 8) * 8)
    if M <= rt:
        return _round_up(M, 8)
    while rt > 128 and (M + rt - 1) // rt < 4:
        rt = max(128, ((rt // 2) // 8) * 8)
    return rt


def _vmem_limit_bytes(row_tile, D, R, z_bytes, w_bytes):
    io = 4 * row_tile * D * z_bytes                                  # double-buffered in + out tiles
    weights = 2 * ((D * R + R * R + R * D) * w_bytes + (6 * R + 3 * D) * 4)
    scratch = 6 * row_tile * max(D, R) * 4                           # f32 intermediates / spill headroom
    total = io + weights + scratch + (8 << 20)
    # Raise above the default scoped limit, but stay safely under v7x's 64 MiB.
    return int(min(max(total, 32 << 20), 48 << 20))


def adapter_forward(z, attention, *remainder, params,
                    compute_dtype=jnp.bfloat16, row_tile=512):
    """Runs the adapter stack on z inside a single fused Pallas kernel.

    z: (batch, seq, base_dim) float32.
    params: dict with w1,b1,g1,be1,w2,b2,g2,be2,w3,b3,g3,be3
            (weights (in, out); per-feature vectors shaped (1, dim)).
    compute_dtype: dtype of the MXU matmul operands (accumulation is f32).
    """
    B, S, D = z.shape
    M = B * S
    z2d = z.reshape(M, D)

    w1, b1, g1, be1 = params["w1"], params["b1"], params["g1"], params["be1"]
    w2, b2, g2, be2 = params["w2"], params["b2"], params["g2"], params["be2"]
    w3, b3, g3, be3 = params["w3"], params["b3"], params["g3"], params["be3"]
    R = w1.shape[1]

    # Large, MXU-aligned row tile; ragged M handled by zero-padding.
    rt = _choose_row_tile(M, row_tile)
    n_tiles = pl.cdiv(M, rt)
    M_pad = n_tiles * rt
    if M_pad != M:
        z2d = jnp.pad(z2d, ((0, M_pad - M), (0, 0)))

    # Ship matmul weights in the compute dtype (halves weight DMA bytes for bf16);
    # biases / LayerNorm params stay f32 for the VPU path.
    w1c = w1.astype(compute_dtype)
    w2c = w2.astype(compute_dtype)
    w3c = w3.astype(compute_dtype)

    z_bytes = jnp.dtype(z.dtype).itemsize
    w_bytes = jnp.dtype(compute_dtype).itemsize

    cost = pl.CostEstimate(
        flops=2 * M_pad * (D * R + R * R + R * D),
        transcendentals=M_pad * (2 * R + 3),
        bytes_accessed=(2 * M_pad * D * z_bytes
                        + (D * R + R * R + R * D) * w_bytes
                        + (6 * R + 3 * D) * 4),
    )

    full = lambda shape: pl.BlockSpec(shape, lambda i: (0, 0))
    kernel = functools.partial(adapter_kernel, compute_dtype=compute_dtype)

    out2d = pl.pallas_call(
        kernel,
        out_shape=jax.ShapeDtypeStruct((M_pad, D), z.dtype),
        grid=(n_tiles,),
        in_specs=[
            pl.BlockSpec((rt, D), lambda i: (i, 0)),                  # z row tile
            full((D, R)), full((1, R)), full((1, R)), full((1, R)),   # layer 1
            full((R, R)), full((1, R)), full((1, R)), full((1, R)),   # layer 2
            full((R, D)), full((1, D)), full((1, D)), full((1, D)),   # layer 3
        ],
        out_specs=pl.BlockSpec((rt, D), lambda i: (i, 0)),
        compiler_params=pltpu.CompilerParams(
            dimension_semantics=("parallel",),
            vmem_limit_bytes=_vmem_limit_bytes(rt, D, R, z_bytes, w_bytes),
        ),
        cost_estimate=cost,
    )(z2d, w1c, b1, g1, be1, w2c, b2, g2, be2, w3c, b3, g3, be3)

    if M_pad != M:
        out2d = out2d[:M]
    z_out = out2d.reshape(B, S, D)
    return (z_out, attention, *remainder)


def init_params(key, base_dim, reduction_dim):
    """Deterministic synthetic parameter init (mimics Linear/LayerNorm shapes)."""
    ks = jax.random.split(key, 6)

    def lin(kw, kb, fan_in, fan_out):
        bound = 1.0 / jnp.sqrt(fan_in)
        w = jax.random.uniform(kw, (fan_in, fan_out), jnp.float32, -bound, bound)
        b = jax.random.uniform(kb, (1, fan_out), jnp.float32, -bound, bound)
        return w, b

    w1, b1 = lin(ks[0], ks[1], base_dim, reduction_dim)
    w2, b2 = lin(ks[2], ks[3], reduction_dim, reduction_dim)
    w3, b3 = lin(ks[4], ks[5], reduction_dim, base_dim)

    return dict(
        w1=w1, b1=b1,
        g1=jnp.ones((1, reduction_dim), jnp.float32),
        be1=jnp.zeros((1, reduction_dim), jnp.float32),
        w2=w2, b2=b2,
        g2=jnp.ones((1, reduction_dim), jnp.float32),
        be2=jnp.zeros((1, reduction_dim), jnp.float32),
        w3=w3, b3=b3,
        g3=jnp.ones((1, base_dim), jnp.float32),
        be3=jnp.zeros((1, base_dim), jnp.float32),
    )


def reference_forward(z, params, compute_dtype=jnp.float32):
    """Pure-JAX reference (same matmul compute dtype as the kernel under test)."""
    x = z.reshape(-1, z.shape[-1]).astype(jnp.float32)

    def mm(a, w):
        return jnp.dot(a.astype(compute_dtype), w.astype(compute_dtype),
                       preferred_element_type=jnp.float32)

    h = mm(x, params["w1"]) + params["b1"]
    h = _gelu_exact(_layernorm(h, params["g1"], params["be1"]))
    h = mm(h, params["w2"]) + params["b2"]
    h = _gelu_exact(_layernorm(h, params["g2"], params["be2"]))
    h = mm(h, params["w3"]) + params["b3"]
    h = _layernorm(h, params["g3"], params["be3"])
    return h.reshape(z.shape)


if __name__ == "__main__":
    key = jax.random.PRNGKey(0)
    k_z, k_attn, k_p = jax.random.split(key, 3)

    batch, seq, base_dim, reduction_dim = 2, 8, 32, 16

    z = jax.random.normal(k_z, (batch, seq, base_dim), dtype=jnp.float32)
    attention = jax.random.normal(k_attn, (batch, seq, seq), dtype=jnp.float32)
    extra = jnp.arange(4, dtype=jnp.float32)  # example "remainder" passthrough

    params = init_params(k_p, base_dim, reduction_dim)

    # 1) f32 matmul path: bit-faithful to the PyTorch module, tight tolerance.
    fwd_f32 = jax.jit(functools.partial(
        adapter_forward, params=params, compute_dtype=jnp.float32))
    z_out, attn_out, extra_out = fwd_f32(z, attention, extra)
    jax.block_until_ready(z_out)
    z_ref_f32 = reference_forward(z, params, compute_dtype=jnp.float32)
    assert jnp.allclose(z_out, z_ref_f32, atol=1e-5, rtol=1e-5), "f32 mismatch"

    # 2) bf16 matmul path (performance default): checked vs a bf16-matmul reference.
    fwd_bf16 = jax.jit(functools.partial(
        adapter_forward, params=params, compute_dtype=jnp.bfloat16))
    z_out_bf16, _, _ = fwd_bf16(z, attention, extra)
    jax.block_until_ready(z_out_bf16)
    z_ref_bf16 = reference_forward(z, params, compute_dtype=jnp.bfloat16)
    assert jnp.allclose(z_out_bf16, z_ref_bf16, atol=2e-2, rtol=2e-2), "bf16 mismatch"

    # Passthrough outputs untouched.
    assert jnp.array_equal(attn_out, attention)
    assert jnp.array_equal(extra_out, extra)

    print("KERNEL_OK")
</pallas_src>

<mosaic_0001>
module attributes {stable_mosaic.version = 11 : i64} {
  func.func @adapter_kernel(%arg0: i32, %arg1: memref<16x32xf32, #tpu.memory_space<vmem>>, %arg2: memref<32x16xf32, #tpu.memory_space<vmem>>, %arg3: memref<1x16xf32, #tpu.memory_space<vmem>>, %arg4: memref<1x16xf32, #tpu.memory_space<vmem>>, %arg5: memref<1x16xf32, #tpu.memory_space<vmem>>, %arg6: memref<16x16xf32, #tpu.memory_space<vmem>>, %arg7: memref<1x16xf32, #tpu.memory_space<vmem>>, %arg8: memref<1x16xf32, #tpu.memory_space<vmem>>, %arg9: memref<1x16xf32, #tpu.memory_space<vmem>>, %arg10: memref<16x32xf32, #tpu.memory_space<vmem>>, %arg11: memref<1x32xf32, #tpu.memory_space<vmem>>, %arg12: memref<1x32xf32, #tpu.memory_space<vmem>>, %arg13: memref<1x32xf32, #tpu.memory_space<vmem>>, %arg14: memref<16x32xf32, #tpu.memory_space<vmem>>) attributes {dimension_semantics = [#tpu.dimension_semantics<parallel>], iteration_bounds = array<i64: 1>, scalar_prefetch = 0 : i64, scratch_operands = 0 : i64, tpu.core_type = #tpu.core_type<tc>, window_params = [{transform_indices = @transform_0, window_bounds = array<i64: 16, 32>}, {pipeline_mode = #tpu.pipeline_mode<synchronous>, transform_indices = @transform_1, window_bounds = array<i64: 32, 16>}, {pipeline_mode = #tpu.pipeline_mode<synchronous>, transform_indices = @transform_2, window_bounds = array<i64: 1, 16>}, {pipeline_mode = #tpu.pipeline_mode<synchronous>, transform_indices = @transform_3, window_bounds = array<i64: 1, 16>}, {pipeline_mode = #tpu.pipeline_mode<synchronous>, transform_indices = @transform_4, window_bounds = array<i64: 1, 16>}, {pipeline_mode = #tpu.pipeline_mode<synchronous>, transform_indices = @transform_5, window_bounds = array<i64: 16, 16>}, {pipeline_mode = #tpu.pipeline_mode<synchronous>, transform_indices = @transform_6, window_bounds = array<i64: 1, 16>}, {pipeline_mode = #tpu.pipeline_mode<synchronous>, transform_indices = @transform_7, window_bounds = array<i64: 1, 16>}, {pipeline_mode = #tpu.pipeline_mode<synchronous>, transform_indices = @transform_8, window_bounds = array<i64: 1, 16>}, {pipeline_mode = #tpu.pipeline_mode<synchronous>, transform_indices = @transform_9, window_bounds = array<i64: 16, 32>}, {pipeline_mode = #tpu.pipeline_mode<synchronous>, transform_indices = @transform_10, window_bounds = array<i64: 1, 32>}, {pipeline_mode = #tpu.pipeline_mode<synchronous>, transform_indices = @transform_11, window_bounds = array<i64: 1, 32>}, {pipeline_mode = #tpu.pipeline_mode<synchronous>, transform_indices = @transform_12, window_bounds = array<i64: 1, 32>}, {transform_indices = @transform_13, window_bounds = array<i64: 16, 32>}]} {
    %c0 = arith.constant 0 : index
    %c0_0 = arith.constant 0 : index
    %0 = vector.load %arg1[%c0, %c0_0] : memref<16x32xf32, #tpu.memory_space<vmem>>, vector<16x32xf32>
    %c0_1 = arith.constant 0 : index
    %c0_2 = arith.constant 0 : index
    %1 = vector.load %arg2[%c0_1, %c0_2] : memref<32x16xf32, #tpu.memory_space<vmem>>, vector<32x16xf32>
    %cst = arith.constant dense<0.000000e+00> : vector<16x16xf32>
    %2 = tpu.matmul %0, %1, %cst {dimension_numbers = #tpu.dot_dimension_numbers<[1], [0], [0], [1], [0, 0, 1, 1], [], []>} : vector<16x32xf32>, vector<32x16xf32>, vector<16x16xf32> -> vector<16x16xf32>
    %c0_3 = arith.constant 0 : index
    %c0_4 = arith.constant 0 : index
    %3 = vector.load %arg3[%c0_3, %c0_4] : memref<1x16xf32, #tpu.memory_space<vmem>>, vector<1x16xf32>
    %4 = vector.broadcast %3 : vector<1x16xf32> to vector<16x16xf32>
    %5 = arith.addf %2, %4 : vector<16x16xf32>
    %c0_5 = arith.constant 0 : index
    %c0_6 = arith.constant 0 : index
    %6 = vector.load %arg4[%c0_5, %c0_6] : memref<1x16xf32, #tpu.memory_space<vmem>>, vector<1x16xf32>
    %c0_7 = arith.constant 0 : index
    %c0_8 = arith.constant 0 : index
    %7 = vector.load %arg5[%c0_7, %c0_8] : memref<1x16xf32, #tpu.memory_space<vmem>>, vector<1x16xf32>
    %cst_9 = arith.constant dense<0.000000e+00> : vector<16xf32>
    %8 = vector.multi_reduction <add>, %5, %cst_9 [1] : vector<16x16xf32> to vector<16xf32>
    %9 = vector.shape_cast %8 : vector<16xf32> to vector<16x1xf32>
    %cst_10 = arith.constant 1.600000e+01 : f32
    %10 = vector.broadcast %cst_10 : f32 to vector<16x1xf32>
    %11 = arith.divf %9, %10 : vector<16x1xf32>
    %12 = vector.broadcast %11 : vector<16x1xf32> to vector<16x16xf32>
    %13 = arith.subf %5, %12 : vector<16x16xf32>
    %14 = arith.mulf %13, %13 : vector<16x16xf32>
    %cst_11 = arith.constant dense<0.000000e+00> : vector<16xf32>
    %15 = vector.multi_reduction <add>, %14, %cst_11 [1] : vector<16x16xf32> to vector<16xf32>
    %16 = vector.shape_cast %15 : vector<16xf32> to vector<16x1xf32>
    %cst_12 = arith.constant 1.600000e+01 : f32
    %17 = vector.broadcast %cst_12 : f32 to vector<16x1xf32>
    %18 = arith.divf %16, %17 : vector<16x1xf32>
    %19 = vector.broadcast %11 : vector<16x1xf32> to vector<16x16xf32>
    %20 = arith.subf %5, %19 : vector<16x16xf32>
    %cst_13 = arith.constant 9.99999974E-6 : f32
    %21 = vector.broadcast %cst_13 : f32 to vector<16x1xf32>
    %22 = arith.addf %18, %21 : vector<16x1xf32>
    %23 = math.rsqrt %22 : vector<16x1xf32>
    %24 = vector.broadcast %23 : vector<16x1xf32> to vector<16x16xf32>
    %25 = arith.mulf %20, %24 : vector<16x16xf32>
    %26 = vector.broadcast %6 : vector<1x16xf32> to vector<16x16xf32>
    %27 = arith.mulf %25, %26 : vector<16x16xf32>
    %28 = vector.broadcast %7 : vector<1x16xf32> to vector<16x16xf32>
    %29 = arith.addf %27, %28 : vector<16x16xf32>
    %cst_14 = arith.constant 5.000000e-01 : f32
    %30 = vector.broadcast %cst_14 : f32 to vector<16x16xf32>
    %31 = arith.mulf %30, %29 : vector<16x16xf32>
    %cst_15 = arith.constant 2.000000e+00 : f32
    %32 = math.sqrt %cst_15 : f32
    %cst_16 = arith.constant 1.000000e+00 : f32
    %33 = arith.divf %cst_16, %32 : f32
    %34 = vector.broadcast %33 : f32 to vector<16x16xf32>
    %35 = arith.mulf %29, %34 : vector<16x16xf32>
    %36 = math.erf %35 : vector<16x16xf32>
    %cst_17 = arith.constant 1.000000e+00 : f32
    %37 = vector.broadcast %cst_17 : f32 to vector<16x16xf32>
    %38 = arith.addf %37, %36 : vector<16x16xf32>
    %39 = arith.mulf %31, %38 : vector<16x16xf32>
    %c0_18 = arith.constant 0 : index
    %c0_19 = arith.constant 0 : index
    %40 = vector.load %arg6[%c0_18, %c0_19] : memref<16x16xf32, #tpu.memory_space<vmem>>, vector<16x16xf32>
    %cst_20 = arith.constant dense<0.000000e+00> : vector<16x16xf32>
    %41 = tpu.matmul %39, %40, %cst_20 {dimension_numbers = #tpu.dot_dimension_numbers<[1], [0], [0], [1], [0, 0, 1, 1], [], []>} : vector<16x16xf32>, vector<16x16xf32>, vector<16x16xf32> -> vector<16x16xf32>
    %c0_21 = arith.constant 0 : index
    %c0_22 = arith.constant 0 : index
    %42 = vector.load %arg7[%c0_21, %c0_22] : memref<1x16xf32, #tpu.memory_space<vmem>>, vector<1x16xf32>
    %43 = vector.broadcast %42 : vector<1x16xf32> to vector<16x16xf32>
    %44 = arith.addf %41, %43 : vector<16x16xf32>
    %c0_23 = arith.constant 0 : index
    %c0_24 = arith.constant 0 : index
    %45 = vector.load %arg8[%c0_23, %c0_24] : memref<1x16xf32, #tpu.memory_space<vmem>>, vector<1x16xf32>
    %c0_25 = arith.constant 0 : index
    %c0_26 = arith.constant 0 : index
    %46 = vector.load %arg9[%c0_25, %c0_26] : memref<1x16xf32, #tpu.memory_space<vmem>>, vector<1x16xf32>
    %cst_27 = arith.constant dense<0.000000e+00> : vector<16xf32>
    %47 = vector.multi_reduction <add>, %44, %cst_27 [1] : vector<16x16xf32> to vector<16xf32>
    %48 = vector.shape_cast %47 : vector<16xf32> to vector<16x1xf32>
    %cst_28 = arith.constant 1.600000e+01 : f32
    %49 = vector.broadcast %cst_28 : f32 to vector<16x1xf32>
    %50 = arith.divf %48, %49 : vector<16x1xf32>
    %51 = vector.broadcast %50 : vector<16x1xf32> to vector<16x16xf32>
    %52 = arith.subf %44, %51 : vector<16x16xf32>
    %53 = arith.mulf %52, %52 : vector<16x16xf32>
    %cst_29 = arith.constant dense<0.000000e+00> : vector<16xf32>
    %54 = vector.multi_reduction <add>, %53, %cst_29 [1] : vector<16x16xf32> to vector<16xf32>
    %55 = vector.shape_cast %54 : vector<16xf32> to vector<16x1xf32>
    %cst_30 = arith.constant 1.600000e+01 : f32
    %56 = vector.broadcast %cst_30 : f32 to vector<16x1xf32>
    %57 = arith.divf %55, %56 : vector<16x1xf32>
    %58 = vector.broadcast %50 : vector<16x1xf32> to vector<16x16xf32>
    %59 = arith.subf %44, %58 : vector<16x16xf32>
    %cst_31 = arith.constant 9.99999974E-6 : f32
    %60 = vector.broadcast %cst_31 : f32 to vector<16x1xf32>
    %61 = arith.addf %57, %60 : vector<16x1xf32>
    %62 = math.rsqrt %61 : vector<16x1xf32>
    %63 = vector.broadcast %62 : vector<16x1xf32> to vector<16x16xf32>
    %64 = arith.mulf %59, %63 : vector<16x16xf32>
    %65 = vector.broadcast %45 : vector<1x16xf32> to vector<16x16xf32>
    %66 = arith.mulf %64, %65 : vector<16x16xf32>
    %67 = vector.broadcast %46 : vector<1x16xf32> to vector<16x16xf32>
    %68 = arith.addf %66, %67 : vector<16x16xf32>
    %cst_32 = arith.constant 5.000000e-01 : f32
    %69 = vector.broadcast %cst_32 : f32 to vector<16x16xf32>
    %70 = arith.mulf %69, %68 : vector<16x16xf32>
    %cst_33 = arith.constant 2.000000e+00 : f32
    %71 = math.sqrt %cst_33 : f32
    %cst_34 = arith.constant 1.000000e+00 : f32
    %72 = arith.divf %cst_34, %71 : f32
    %73 = vector.broadcast %72 : f32 to vector<16x16xf32>
    %74 = arith.mulf %68, %73 : vector<16x16xf32>
    %75 = math.erf %74 : vector<16x16xf32>
    %cst_35 = arith.constant 1.000000e+00 : f32
    %76 = vector.broadcast %cst_35 : f32 to vector<16x16xf32>
    %77 = arith.addf %76, %75 : vector<16x16xf32>
    %78 = arith.mulf %70, %77 : vector<16x16xf32>
    %c0_36 = arith.constant 0 : index
    %c0_37 = arith.constant 0 : index
    %79 = vector.load %arg10[%c0_36, %c0_37] : memref<16x32xf32, #tpu.memory_space<vmem>>, vector<16x32xf32>
    %cst_38 = arith.constant dense<0.000000e+00> : vector<16x32xf32>
    %80 = tpu.matmul %78, %79, %cst_38 {dimension_numbers = #tpu.dot_dimension_numbers<[1], [0], [0], [1], [0, 0, 1, 1], [], []>} : vector<16x16xf32>, vector<16x32xf32>, vector<16x32xf32> -> vector<16x32xf32>
    %c0_39 = arith.constant 0 : index
    %c0_40 = arith.constant 0 : index
    %81 = vector.load %arg11[%c0_39, %c0_40] : memref<1x32xf32, #tpu.memory_space<vmem>>, vector<1x32xf32>
    %82 = vector.broadcast %81 : vector<1x32xf32> to vector<16x32xf32>
    %83 = arith.addf %80, %82 : vector<16x32xf32>
    %c0_41 = arith.constant 0 : index
    %c0_42 = arith.constant 0 : index
    %84 = vector.load %arg12[%c0_41, %c0_42] : memref<1x32xf32, #tpu.memory_space<vmem>>, vector<1x32xf32>
    %c0_43 = arith.constant 0 : index
    %c0_44 = arith.constant 0 : index
    %85 = vector.load %arg13[%c0_43, %c0_44] : memref<1x32xf32, #tpu.memory_space<vmem>>, vector<1x32xf32>
    %cst_45 = arith.constant dense<0.000000e+00> : vector<16xf32>
    %86 = vector.multi_reduction <add>, %83, %cst_45 [1] : vector<16x32xf32> to vector<16xf32>
    %87 = vector.shape_cast %86 : vector<16xf32> to vector<16x1xf32>
    %cst_46 = arith.constant 3.200000e+01 : f32
    %88 = vector.broadcast %cst_46 : f32 to vector<16x1xf32>
    %89 = arith.divf %87, %88 : vector<16x1xf32>
    %90 = vector.broadcast %89 : vector<16x1xf32> to vector<16x32xf32>
    %91 = arith.subf %83, %90 : vector<16x32xf32>
    %92 = arith.mulf %91, %91 : vector<16x32xf32>
    %cst_47 = arith.constant dense<0.000000e+00> : vector<16xf32>
    %93 = vector.multi_reduction <add>, %92, %cst_47 [1] : vector<16x32xf32> to vector<16xf32>
    %94 = vector.shape_cast %93 : vector<16xf32> to vector<16x1xf32>
    %cst_48 = arith.constant 3.200000e+01 : f32
    %95 = vector.broadcast %cst_48 : f32 to vector<16x1xf32>
    %96 = arith.divf %94, %95 : vector<16x1xf32>
    %97 = vector.broadcast %89 : vector<16x1xf32> to vector<16x32xf32>
    %98 = arith.subf %83, %97 : vector<16x32xf32>
    %cst_49 = arith.constant 9.99999974E-6 : f32
    %99 = vector.broadcast %cst_49 : f32 to vector<16x1xf32>
    %100 = arith.addf %96, %99 : vector<16x1xf32>
    %101 = math.rsqrt %100 : vector<16x1xf32>
    %102 = vector.broadcast %101 : vector<16x1xf32> to vector<16x32xf32>
    %103 = arith.mulf %98, %102 : vector<16x32xf32>
    %104 = vector.broadcast %84 : vector<1x32xf32> to vector<16x32xf32>
    %105 = arith.mulf %103, %104 : vector<16x32xf32>
    %106 = vector.broadcast %85 : vector<1x32xf32> to vector<16x32xf32>
    %107 = arith.addf %105, %106 : vector<16x32xf32>
    %c0_50 = arith.constant 0 : index
    %c0_51 = arith.constant 0 : index
    %108 = vector.load %arg14[%c0_50, %c0_51] : memref<16x32xf32, #tpu.memory_space<vmem>>, vector<16x32xf32>
    tpu.vector_store %arg14[%c0_50, %c0_51], %107 {strides = array<i32>} : memref<16x32xf32, #tpu.memory_space<vmem>>, vector<16x32xf32>,
    return
  }
  func.func @transform_0(%arg0: i32) -> (i32, i32) {
    %c0_i32 = arith.constant 0 : i32
    %c0_i32_0 = arith.constant 0 : i32
    return %arg0, %c0_i32 : i32, i32
  }
  func.func @transform_1(%arg0: i32) -> (i32, i32) {
    %c0_i32 = arith.constant 0 : i32
    %c0_i32_0 = arith.constant 0 : i32
    %c0_i32_1 = arith.constant 0 : i32
    return %c0_i32, %c0_i32_0 : i32, i32
  }
  func.func @transform_2(%arg0: i32) -> (i32, i32) {
    %c0_i32 = arith.constant 0 : i32
    %c0_i32_0 = arith.constant 0 : i32
    %c0_i32_1 = arith.constant 0 : i32
    return %c0_i32, %c0_i32_0 : i32, i32
  }
  func.func @transform_3(%arg0: i32) -> (i32, i32) {
    %c0_i32 = arith.constant 0 : i32
    %c0_i32_0 = arith.constant 0 : i32
    %c0_i32_1 = arith.constant 0 : i32
    return %c0_i32, %c0_i32_0 : i32, i32
  }
  func.func @transform_4(%arg0: i32) -> (i32, i32) {
    %c0_i32 = arith.constant 0 : i32
    %c0_i32_0 = arith.constant 0 : i32
    %c0_i32_1 = arith.constant 0 : i32
    return %c0_i32, %c0_i32_0 : i32, i32
  }
  func.func @transform_5(%arg0: i32) -> (i32, i32) {
    %c0_i32 = arith.constant 0 : i32
    %c0_i32_0 = arith.constant 0 : i32
    %c0_i32_1 = arith.constant 0 : i32
    return %c0_i32, %c0_i32_0 : i32, i32
  }
  func.func @transform_6(%arg0: i32) -> (i32, i32) {
    %c0_i32 = arith.constant 0 : i32
    %c0_i32_0 = arith.constant 0 : i32
    %c0_i32_1 = arith.constant 0 : i32
    return %c0_i32, %c0_i32_0 : i32, i32
  }
  func.func @transform_7(%arg0: i32) -> (i32, i32) {
    %c0_i32 = arith.constant 0 : i32
    %c0_i32_0 = arith.constant 0 : i32
    %c0_i32_1 = arith.constant 0 : i32
    return %c0_i32, %c0_i32_0 : i32, i32
  }
  func.func @transform_8(%arg0: i32) -> (i32, i32) {
    %c0_i32 = arith.constant 0 : i32
    %c0_i32_0 = arith.constant 0 : i32
    %c0_i32_1 = arith.constant 0 : i32
    return %c0_i32, %c0_i32_0 : i32, i32
  }
  func.func @transform_9(%arg0: i32) -> (i32, i32) {
    %c0_i32 = arith.constant 0 : i32
    %c0_i32_0 = arith.constant 0 : i32
    %c0_i32_1 = arith.constant 0 : i32
    return %c0_i32, %c0_i32_0 : i32, i32
  }
  func.func @transform_10(%arg0: i32) -> (i32, i32) {
    %c0_i32 = arith.constant 0 : i32
    %c0_i32_0 = arith.constant 0 : i32
    %c0_i32_1 = arith.constant 0 : i32
    return %c0_i32, %c0_i32_0 : i32, i32
  }
  func.func @transform_11(%arg0: i32) -> (i32, i32) {
    %c0_i32 = arith.constant 0 : i32
    %c0_i32_0 = arith.constant 0 : i32
    %c0_i32_1 = arith.constant 0 : i32
    return %c0_i32, %c0_i32_0 : i32, i32
  }
  func.func @transform_12(%arg0: i32) -> (i32, i32) {
    %c0_i32 = arith.constant 0 : i32
    %c0_i32_0 = arith.constant 0 : i32
    %c0_i32_1 = arith.constant 0 : i32
    return %c0_i32, %c0_i32_0 : i32, i32
  }
  func.func @transform_13(%arg0: i32) -> (i32, i32) {
    %c0_i32 = arith.constant 0 : i32
    %c0_i32_0 = arith.constant 0 : i32
    return %arg0, %c0_i32 : i32, i32
  }
}

</mosaic_0001>

<bundles_post_ra>
// kernel: adapter_forward.1
= control target key start
LH: loop header
LB: loop body
LE: loop exit
PB: predicated region body
PF: predicated region fallthrough
CT: control target
= control target key end

     0   :  { %18 = vsyncpa [#allocation3], 0  ;;  %s855_s0 = inlined_call_operand.hbm [shape: f32[16,32], index: 0, kind: input, shape index: {}]   ;;  %s856_s1 = inlined_call_operand.hbm [shape: f32[32,16], index: 1, kind: input, shape index: {}]   ;;  %s857_s2 = inlined_call_operand.vmem [shape: f32[1,16], index: 2, kind: input, shape index: {}]   ;;  %s858_s3 = inlined_call_operand.vmem [shape: f32[1,16], index: 3, kind: input, shape index: {}, may-alias: {3,7}]   ;;  %s859_s4 = inlined_call_operand.vmem [shape: f32[1,16], index: 4, kind: input, shape index: {}, may-alias: {4,8}]   ;;  %s860_s5 = inlined_call_operand.hbm [shape: f32[16,16], index: 5, kind: input, shape index: {}]   ;;  %s861_s6 = inlined_call_operand.vmem [shape: f32[1,16], index: 6, kind: input, shape index: {}]   ;;  %s862_s7 = inlined_call_operand.vmem [shape: f32[1,16], index: 7, kind: input, shape index: {}, may-alias: {3,7}]   ;;  %s863_s8 = inlined_call_operand.vmem [shape: f32[1,16], index: 8, kind: input, shape index: {}, may-alias: {4,8}]   ;;  %s864_s9 = inlined_call_operand.vmem [shape: f32[16,32], index: 9, kind: input, shape index: {}]   ;;  %s865_s10 = inlined_call_operand.vmem [shape: f32[1,32], index: 10, kind: input, shape index: {}]   ;;  %s866_s11 = inlined_call_operand.vmem [shape: f32[1,32], index: 11, kind: input, shape index: {}]   ;;  %s867_s12 = inlined_call_operand.vmem [shape: f32[1,32], index: 12, kind: input, shape index: {}]   ;;  %s868_s13 = inlined_call_operand.hbm [shape: f32[16,32], index: 13, kind: output, shape index: {}]  }
   0x1   :  { %19 = vsyncpa [#allocation6], 0 }
   0x2   :  { %20 = vsyncpa [#allocation4], 0  ;;  %s702_s25 = smov [#allocation5]   ;;  %s703_s27 = smov [#allocation2]  }
   0x3   :  { %s38_s26 = sshll.u32 %s702_s25, 4  ;;  %s26_s28 = sshll.u32 %s703_s27, 4  ;;  %s39_s26 = int_to_ptr.vmem [resolvable:$true] %s38_s26  ;;  %s27_s28 = int_to_ptr.vmem [resolvable:$true] %s26_s28 }
   0x4   :  { %s624_s29 = scalar_lea.vmem %s39_s26, 512  ;;  %p629_p1 = scmp.lt.s32.totalorder %s39_s26, %s39_s26 }
   0x5   :  { %p625_p0 = scmp.ne.s32.totalorder %s39_s26, %s624_s29  ;;  %p630_p2 = scmp.lt.s32.totalorder %s624_s29, %s624_s29 }
   0x7   :  { %p631_p3 = por %p630_p2, %p629_p1 }
   0x9   :  { %p632_p4 = pnand %p631_p3, %p625_p0 }
   0xb   :  { %635 = shalt.err (!%p632_p4)
}
   0xc   :  { %s704_s30 = smov 128   ;;  %s705_s14 = smov 8  }
   0xd   :  { %44 = dma.hbm_to_vmem [thread:$0]  %s856_s1, 512, %s39_s26, [#allocation6], %s704_s30, %s704_s30, %s705_s14  }
   0xe   :  { %s644_s17 = scalar_lea.vmem %s27_s28, 256  ;;  %p649_p6 = scmp.lt.s32.totalorder %s27_s28, %s27_s28 }
   0xf   :  { %p645_p5 = scmp.ne.s32.totalorder %s27_s28, %s644_s17  ;;  %p650_p7 = scmp.lt.s32.totalorder %s644_s17, %s644_s17 }
  0x11   :  { %p651_p8 = por %p650_p7, %p649_p6 }
  0x13   :  { %p652_p9 = pnand %p651_p8, %p645_p5 }
  0x15   :  { %655 = shalt.err (!%p652_p9)
}
  0x16   :  { %32 = dma.hbm_to_vmem [thread:$0]  %s855_s0, 256, %s27_s28, [#allocation3], %s704_s30, %s704_s30, %s705_s14  }
  0x17   :  { %s706_s20 = smov [#allocation7]  }
  0x18   :  { %s56_s21 = sshll.u32 %s706_s20, 4  ;;  %s57_s21 = int_to_ptr.vmem [resolvable:$true] %s56_s21 }
  0x19   :  { %s664_s22 = scalar_lea.vmem %s57_s21, 256  ;;  %p669_p11 = scmp.lt.s32.totalorder %s57_s21, %s57_s21 }
  0x1a   :  { %p665_p10 = scmp.ne.s32.totalorder %s57_s21, %s664_s22  ;;  %p670_p12 = scmp.lt.s32.totalorder %s664_s22, %s664_s22 }
  0x1c   :  { %p671_p13 = por %p670_p12, %p669_p11 }
  0x1e   :  { %p672_p0 = pnand %p671_p13, %p665_p10 }
  0x20   :  { %675 = shalt.err (!%p672_p0)
}
  0x21   :  { %62 = dma.hbm_to_vmem [thread:$0]  %s860_s5, 256, %s57_s21, [#allocation6], %s704_s30, %s704_s30, %s705_s14  }
  0x22   :  { %696 = dma.done.wait [#allocation3], 256  }
  0x23   :  { %697 = vsyncadd [#allocation3], 4294967040 }
  0x24   :  { %698 = dma.done.wait [#allocation6], 768  }
  0x25   :  { %699 = vsyncadd [#allocation6], 4294966528  ;;  %vm99_vm0 = vcmask 261120   ;;  %v91_v0 = vld [vmem:[#allocation5 + $0x18] sm:$0xff]  ;;  %v90_v1 = vld [vmem:[#allocation5 + $0x10] sm:$0xff]  ;;  %vm183_vm1 = vcmask 130048  }
  0x26   :  { %565 = vmatprep.subr.mxu0 %v91_v0  ;;  %v86_v2 = vld [vmem:[#allocation2] sm:$0xff]  ;;  %v89_v3 = vld [vmem:[#allocation5 + $0x8] sm:$0xff]  ;;  %v88_v4 = vld [vmem:[#allocation5] sm:$0xff]  ;;  %s707_s21 = smov [#allocation8]  }
  0x27   :  { %566 = vmatpush3.msra.mxu0 %v91_v0  ;;  %573 = vmatprep.mubr.msk.f32.mxu0 %vm99_vm0, %v86_v2  ;;  %v87_v5 = vld [vmem:[#allocation2 + $0x8] sm:$0xff]  ;;  %v536_v7 = vld [vmem:[%s857_s2] ss:$0 sm:$0xff]  ;;  %v238_v23 = vld [vmem:[#allocation7 + $0x8] sm:$0xff]  ;;  %s523_s22 = sshll.u32 %s707_s21, 4  ;;  %s524_s22 = int_to_ptr.vmem [resolvable:$true] %s523_s22 }
  0x28   :  { %567 = vmatprep.subr.mxu0 %v90_v1  ;;  %576 = vmatprep.subr.mxu1 %v238_v23  ;;  %v237_v24 = vld [vmem:[#allocation7] sm:$0xff]  ;;  %v539_v32 = vld [vmem:[%s858_s3] ss:$0 sm:$0xff]  ;;  %s676_s1 = scalar_lea.vmem %s524_s22, 256  ;;  %p681_p2 = scmp.lt.s32.totalorder %s524_s22, %s524_s22 }
  0x29   :  { %568 = vmatpush3.msra.mxu0 %v90_v1  ;;  %577 = vmatpush3.msra.mxu1 %v238_v23  ;;  %v540_v34 = vld [vmem:[%s859_s4] ss:$0 sm:$0xff]  ;;  %p677_p1 = scmp.ne.s32.totalorder %s524_s22, %s676_s1  ;;  %p682_p3 = scmp.lt.s32.totalorder %s676_s1, %s676_s1 }
  0x2a   :  { %569 = vmatprep.subr.mxu0 %v89_v3  ;;  %578 = vmatprep.subr.mxu1 %v237_v24  ;;  %v541_v51 = vld [vmem:[%s861_s6] ss:$0 sm:$0xff] }
  0x2b   :  { %570 = vmatpush3.msra.mxu0 %v89_v3  ;;  %579 = vmatpush3.msra.mxu1 %v237_v24  ;;  %p683_p4 = por %p682_p3, %p681_p2 }
  0x2c   :  { %571 = vmatprep.subr.mxu0 %v88_v4 }
  0x2d   :  { %572 = vmatpush3.msra.mxu0 %v88_v4  ;;  %v382_v4 = vld [vmem:[%s864_s9 + $0x8] sm:$0xff]  ;;  %p684_p5 = pnand %p683_p4, %p677_p1 }
  0x2e   :  { %574 = vmatmul.mubr.msk.f32.vlgmr.msra.gmra.mxu0 %vm99_vm0, %v87_v5  ;;  %v381_v5 = vld [vmem:[%s864_s9] sm:$0xff]  ;;  %583 = vmatprep.subr.mxu1 %v382_v4 }
  0xee   :  { %v575_v6 = vpop.f32.mrf.mxu0 }
  0xef   :  { %v178_v10 = vadd.f32 %v575_v6, %v536_v7 }
  0xf0   :  { %v172_v8 = vpop.f32.mrf.mxu0 }
  0xf1   :  { %v173_v9 = vadd.f32 %v536_v7, %v172_v8  ;;  %v187_v12 = vsel %vm183_vm1, %v178_v10, 0.0 }
  0xf3   :  { %v184_v11 = vsel %vm183_vm1, %v173_v9, 0.0 }
  0xf4   :  { %185 = vadd.xlane.f32.xlu0 %v184_v11 }
  0xf8   :  { %188 = vadd.xlane.f32.xlu0 %v187_v12 }
 0x17d   :  { %v186_v13 = vpop.xlane.xlu0 %185 }
 0x17e   :  { %v191_v14 = vmul.f32 0.0625, %v186_v13  ;;  %v544_v13 = vld [vmem:[%s862_s7] ss:$0 sm:$0xff] }
 0x180   :  { %v193_v15 = vsub.f32 %v173_v9, %v191_v14 }
 0x181   :  { %v189_v16 = vpop.xlane.xlu0 %188 }
 0x182   :  { %v192_v17 = vmul.f32 0.0625, %v189_v16  ;;  %v195_v18 = vmul.f32 %v193_v15, %v193_v15  ;;  %v545_v16 = vld [vmem:[%s863_s8] ss:$0 sm:$0xff] }
 0x184   :  { %v194_v19 = vsub.f32 %v178_v10, %v192_v17  ;;  %v197_v20 = vsel %vm183_vm1, %v195_v18, 0.0 }
 0x185   :  { %198 = vadd.xlane.f32.xlu1 %v197_v20 }
 0x186   :  { %v196_v21 = vmul.f32 %v194_v19, %v194_v19 }
 0x188   :  { %v200_v22 = vsel %vm183_vm1, %v196_v21, 0.0 }
 0x189   :  { %201 = vadd.xlane.f32.xlu1 %v200_v22 }
 0x20e   :  { %v199_v25 = vpop.xlane.xlu1 %198 }
 0x20f   :  { %v203_v26 = vmul.f32 0.0625, %v199_v25 }
 0x211   :  { %v205_v27 = vadd.f32 1e-05, %v203_v26 }
 0x212   :  { %v202_v28 = vpop.xlane.xlu1 %201 }
 0x213   :  { %596 = vrsqrt.f32 %v205_v27  ;;  %v204_v29 = vmul.f32 0.0625, %v202_v28 }
 0x215   :  { %v206_v30 = vadd.f32 1e-05, %v204_v29 }
 0x217   :  { %598 = vrsqrt.f32 %v206_v30 }
 0x220   :  { %v597_v31 = vpop.eup %596 }
 0x221   :  { %v209_v33 = vmul.f32 %v597_v31, %v193_v15 }
 0x223   :  { %v217_v35 = vmul.f32 %v539_v32, %v209_v33 }
 0x224   :  { %v599_v36 = vpop.eup %598 }
 0x225   :  { %v210_v37 = vmul.f32 %v599_v36, %v194_v19  ;;  %v225_v38 = vadd.f32 %v540_v34, %v217_v35 }
 0x227   :  { %v218_v39 = vmul.f32 %v539_v32, %v210_v37  ;;  %v229_v40 = vmul.f32 0.70710677, %v225_v38  ;;  %v227_v44 = vmul.f32 0.5, %v225_v38  ;;  %v546_v32 = vld [vmem:[%s865_s10] ss:$0 sm:$0xff] }
 0x229   :  { %v226_v41 = vadd.f32 %v540_v34, %v218_v39  ;;  %600 = verf.f32 %v229_v40 }
 0x22b   :  { %v230_v42 = vmul.f32 0.70710677, %v226_v41  ;;  %v228_v48 = vmul.f32 0.5, %v226_v41 }
 0x22d   :  { %602 = verf.f32 %v230_v42 }
 0x236   :  { %v601_v43 = vpop.eup %600 }
 0x237   :  { %v233_v45 = vadd.f32 1.0, %v601_v43 }
 0x239   :  { %v235_v46 = vmul.f32 %v233_v45, %v227_v44 }
 0x23a   :  { %v603_v47 = vpop.eup %602 }
 0x23b   :  { %580 = vmatprep.mubr.msk.f32.mxu1 %vm183_vm1, %v235_v46  ;;  %v234_v49 = vadd.f32 1.0, %v603_v47 }
 0x23d   :  { %v236_v50 = vmul.f32 %v234_v49, %v228_v48 }
 0x23f   :  { %581 = vmatmul.mubr.msk.f32.vlgmr.msra.gmra.mxu1 %vm183_vm1, %v236_v50 }
 0x240   :  { %584 = vmatpush3.msra.mxu1 %v382_v4 }
 0x241   :  { %585 = vmatprep.subr.mxu1 %v381_v5 }
 0x242   :  { %586 = vmatpush3.msra.mxu1 %v381_v5 }
 0x2ff   :  { %v582_v52 = vpop.f32.mrf.mxu1 }
 0x300   :  { %v324_v53 = vadd.f32 %v582_v52, %v541_v51 }
 0x301   :  { %v318_v54 = vpop.f32.mrf.mxu1 }
 0x302   :  { %v319_v55 = vadd.f32 %v541_v51, %v318_v54  ;;  %v332_v56 = vsel %vm183_vm1, %v324_v53, 0.0 }
 0x303   :  { %333 = vadd.xlane.f32.xlu1 %v332_v56  ;;  %v549_v56 = vld [vmem:[%s866_s11] ss:$0 sm:$0xff] }
 0x304   :  { %v329_v57 = vsel %vm183_vm1, %v319_v55, 0.0 }
 0x305   :  { %330 = vadd.xlane.f32.xlu0 %v329_v57 }
 0x38c   :  { %v334_v58 = vpop.xlane.xlu1 %333 }
 0x38d   :  { %v336_v59 = vmul.f32 0.0625, %v334_v58 }
 0x38e   :  { %v331_v60 = vpop.xlane.xlu0 %330 }
 0x38f   :  { %v338_v61 = vsub.f32 %v324_v53, %v336_v59  ;;  %v335_v62 = vmul.f32 0.0625, %v331_v60  ;;  %v550_v59 = vld [vmem:[%s867_s12] ss:$0 sm:$0xff] }
 0x391   :  { %v337_v63 = vsub.f32 %v319_v55, %v335_v62  ;;  %v340_v0 = vmul.f32 %v338_v61, %v338_v61 }
 0x393   :  { %v344_v1 = vsel %vm183_vm1, %v340_v0, 0.0  ;;  %v339_v2 = vmul.f32 %v337_v63, %v337_v63 }
 0x394   :  { %345 = vadd.xlane.f32.xlu1 %v344_v1 }
 0x395   :  { %v341_v3 = vsel %vm183_vm1, %v339_v2, 0.0 }
 0x396   :  { %342 = vadd.xlane.f32.xlu0 %v341_v3 }
 0x41d   :  { %v346_v6 = vpop.xlane.xlu1 %345 }
 0x41e   :  { %v348_v7 = vmul.f32 0.0625, %v346_v6 }
 0x41f   :  { %v343_v8 = vpop.xlane.xlu0 %342 }
 0x420   :  { %v350_v9 = vadd.f32 1e-05, %v348_v7  ;;  %v347_v10 = vmul.f32 0.0625, %v343_v8 }
 0x422   :  { %604 = vrsqrt.f32 %v350_v9  ;;  %v349_v11 = vadd.f32 1e-05, %v347_v10 }
 0x424   :  { %606 = vrsqrt.f32 %v349_v11 }
 0x42f   :  { %v605_v12 = vpop.eup %604 }
 0x430   :  { %v354_v14 = vmul.f32 %v605_v12, %v338_v61 }
 0x431   :  { %v607_v15 = vpop.eup %606 }
 0x432   :  { %v353_v17 = vmul.f32 %v607_v15, %v337_v63  ;;  %v362_v18 = vmul.f32 %v544_v13, %v354_v14 }
 0x434   :  { %v361_v19 = vmul.f32 %v544_v13, %v353_v17  ;;  %v370_v20 = vadd.f32 %v545_v16, %v362_v18 }
 0x436   :  { %v369_v21 = vadd.f32 %v545_v16, %v361_v19  ;;  %v374_v22 = vmul.f32 0.70710677, %v370_v20  ;;  %v372_v29 = vmul.f32 0.5, %v370_v20 }
 0x438   :  { %v373_v23 = vmul.f32 0.70710677, %v369_v21  ;;  %608 = verf.f32 %v374_v22  ;;  %v371_v27 = vmul.f32 0.5, %v369_v21 }
 0x43a   :  { %610 = verf.f32 %v373_v23 }
 0x445   :  { %v609_v24 = vpop.eup %608 }
 0x446   :  { %v378_v26 = vadd.f32 1.0, %v609_v24 }
 0x447   :  { %v611_v25 = vpop.eup %610 }
 0x448   :  { %v377_v28 = vadd.f32 1.0, %v611_v25  ;;  %v380_v31 = vmul.f32 %v378_v26, %v372_v29 }
 0x44a   :  { %v379_v30 = vmul.f32 %v377_v28, %v371_v27 }
 0x44c   :  { %587 = vmatprep.mubr.msk.f32.mxu1 %vm183_vm1, %v379_v30 }
 0x44d   :  { %588 = vmatmul.mubr.msk.f32.vlgmr.msra.gmra.mxu1 %vm183_vm1, %v380_v31 }
 0x50d   :  { %v589_v33 = vpop.f32.mrf.mxu1 }
 0x50e   :  { %v468_v34 = vadd.f32 %v589_v33, %v546_v32 }
 0x50f   :  { %v462_v35 = vpop.f32.mrf.mxu1 }
 0x510   :  { %v463_v36 = vadd.f32 %v546_v32, %v462_v35  ;;  %v476_v37 = vsel %vm99_vm0, %v468_v34, 0.0 }
 0x511   :  { %477 = vadd.xlane.f32.xlu1 %v476_v37 }
 0x512   :  { %v473_v38 = vsel %vm99_vm0, %v463_v36, 0.0 }
 0x513   :  { %474 = vadd.xlane.f32.xlu0 %v473_v38 }
 0x59a   :  { %v478_v39 = vpop.xlane.xlu1 %477 }
 0x59b   :  { %v481_v40 = vmul.f32 0.03125, %v478_v39 }
 0x59c   :  { %v475_v41 = vpop.xlane.xlu0 %474 }
 0x59d   :  { %v483_v42 = vsub.f32 %v468_v34, %v481_v40  ;;  %v480_v43 = vmul.f32 0.03125, %v475_v41 }
 0x59f   :  { %v482_v44 = vsub.f32 %v463_v36, %v480_v43  ;;  %v485_v45 = vmul.f32 %v483_v42, %v483_v42 }
 0x5a1   :  { %v489_v46 = vsel %vm99_vm0, %v485_v45, 0.0  ;;  %v484_v47 = vmul.f32 %v482_v44, %v482_v44 }
 0x5a2   :  { %490 = vadd.xlane.f32.xlu1 %v489_v46 }
 0x5a3   :  { %v486_v48 = vsel %vm99_vm0, %v484_v47, 0.0 }
 0x5a4   :  { %487 = vadd.xlane.f32.xlu0 %v486_v48 }
 0x62b   :  { %v491_v49 = vpop.xlane.xlu1 %490 }
 0x62c   :  { %v493_v50 = vmul.f32 0.03125, %v491_v49 }
 0x62d   :  { %v488_v51 = vpop.xlane.xlu0 %487 }
 0x62e   :  { %v495_v52 = vadd.f32 1e-05, %v493_v50  ;;  %v492_v53 = vmul.f32 0.03125, %v488_v51 }
 0x630   :  { %612 = vrsqrt.f32 %v495_v52  ;;  %v494_v54 = vadd.f32 1e-05, %v492_v53 }
 0x632   :  { %614 = vrsqrt.f32 %v494_v54 }
 0x63d   :  { %v613_v55 = vpop.eup %612 }
 0x63e   :  { %v499_v57 = vmul.f32 %v613_v55, %v483_v42 }
 0x63f   :  { %v615_v58 = vpop.eup %614 }
 0x640   :  { %v498_v60 = vmul.f32 %v615_v58, %v482_v44  ;;  %v507_v61 = vmul.f32 %v549_v56, %v499_v57 }
 0x642   :  { %v506_v62 = vmul.f32 %v549_v56, %v498_v60  ;;  %v515_v63 = vadd.f32 %v550_v59, %v507_v61 }
 0x644   :  { %v514_v0 = vadd.f32 %v550_v59, %v506_v62  ;;  %517 = vst.msk [vmem:[#allocation8 + $0x8] sm:$0xff] %vm99_vm0, %v515_v63 }
 0x646   :  { %516 = vst.msk [vmem:[#allocation8] sm:$0xff] %vm99_vm0, %v514_v0 }
 0x647   :  { %687 = shalt.err (!%p684_p5)
}
 0x648   :  { %529 = dma.vmem_to_hbm [thread:$0]  %s524_s22, 256, %s868_s13, [#allocation4], %s704_s30, %s704_s30, %s705_s14  }
 0x649   :  { %700 = dma.done.wait [#allocation4], 256  }
 0x64a   :  { %701 = vsyncadd [#allocation4], 4294967040 }
 0x64b   :  { %533 = vsyncpa [#allocation3], 1 }
 0x64c   :  { %534 = vsyncpa [#allocation6], 1 }
 0x64d   :  { %535 = vsyncpa [#allocation4], 1 }

</bundles_post_ra>
